<compile_context>
chip_gen: v7x
topology: tpu7x:2x2x1
jax: 0.10.0
libtpu: 0.0.40
codegen_flags: <defaults>
</compile_context>

<pallas_src>
import jax
import jax.numpy as jnp
from jax import lax
from jax.experimental import pallas as pl
from jax.experimental.pallas import tpu as pltpu

# ---- problem sizes (small, consistent with the module's forward) ----
N = 2            # batch
CIN = 4          # input channels
H = W = 16       # spatial
HID = 32         # base_model.fc.in_features (backbone feature width)
NUM_CLASSES = 10
KH = KW = 3      # conv kernel
KDIM = KH * KW * CIN     # 36   (im2col contraction dim)
KDIM_B = KDIM + 1        # 37   (+1 ones column carrying the conv bias)
HW = H * W               # 256 spatial positions per sample


def _model_kernel(p_ref, cw_ref, pool_ref, fw_ref, fb_ref, out_ref):
    """Fused conv(im2col matmul, bias folded) -> ReLU -> avg-pool -> linear.

    p_ref   : (N*H*W, KDIM_B)      im2col patches + ones column (VMEM)
    cw_ref  : (KDIM_B, HID)        conv weights (last row = conv bias)
    pool_ref: (N, N*H*W)           block-diagonal 1/HW pooling matrix
    fw_ref  : (HID, NUM_CLASSES)   classifier weights
    fb_ref  : (1, NUM_CLASSES)     classifier bias
    out_ref : (N, NUM_CLASSES)     logits
    """
    # Conv + bias for the whole batch: one (512, 37) @ (37, 32) MXU matmul.
    acc = jnp.dot(p_ref[...], cw_ref[...], preferred_element_type=jnp.float32)
    acc = jnp.maximum(acc, 0.0)                                   # ReLU

    # Global average pool per sample as an MXU matmul: (2, 512) @ (512, 32).
    feat = jnp.dot(pool_ref[...], acc, preferred_element_type=jnp.float32)

    # Classifier: (2, 32) @ (32, 10) + bias.
    logits = jnp.dot(feat, fw_ref[...], preferred_element_type=jnp.float32)
    out_ref[...] = (logits + fb_ref[...]).astype(out_ref.dtype)


def nousta_nocsta_forward(x_nhwc, conv_w, conv_b, fc_w, fc_b):
    """x_nhwc: (N, H, W, CIN) float32 -> logits (N, NUM_CLASSES) float32."""
    # ---- wrapper-side layout plumbing: pad + im2col + bias/pool constants ----
    x_pad = jnp.pad(x_nhwc, ((0, 0), (1, 1), (1, 1), (0, 0)))
    taps = []
    for kh in range(KH):
        for kw in range(KW):
            taps.append(x_pad[:, kh:kh + H, kw:kw + W, :])        # (N, H, W, CIN)
    # tap order (kh, kw, cin) matches conv_w.reshape(KDIM, HID) row-major order.
    patches = jnp.concatenate(taps, axis=-1).reshape(N * HW, KDIM)
    # Append a ones column so the conv bias rides inside the matmul.
    patches = jnp.concatenate(
        [patches, jnp.ones((N * HW, 1), jnp.float32)], axis=-1)   # (512, 37)

    cw2 = jnp.concatenate(
        [conv_w.reshape(KDIM, HID), conv_b.reshape(1, HID)], axis=0)  # (37, 32)

    # Block-diagonal averaging matrix: pool[n, n*HW:(n+1)*HW] = 1/HW.
    pool = jnp.kron(jnp.eye(N, dtype=jnp.float32),
                    jnp.full((1, HW), 1.0 / HW, jnp.float32))      # (2, 512)

    fb2 = fc_b.reshape(1, NUM_CLASSES)

    return pl.pallas_call(
        _model_kernel,
        out_shape=jax.ShapeDtypeStruct((N, NUM_CLASSES), jnp.float32),
        grid_spec=pltpu.PrefetchScalarGridSpec(
            num_scalar_prefetch=0,
            grid=(1,),   # whole batch in one step; ~90 KB total live data.
            in_specs=[
                pl.BlockSpec((N * HW, KDIM_B), lambda i: (0, 0)),
                pl.BlockSpec((KDIM_B, HID), lambda i: (0, 0)),
                pl.BlockSpec((N, N * HW), lambda i: (0, 0)),
                pl.BlockSpec((HID, NUM_CLASSES), lambda i: (0, 0)),
                pl.BlockSpec((1, NUM_CLASSES), lambda i: (0, 0)),
            ],
            out_specs=pl.BlockSpec((N, NUM_CLASSES), lambda i: (0, 0)),
        ),
        compiler_params=pltpu.CompilerParams(
            dimension_semantics=("arbitrary",)),
    )(patches, cw2, pool, fc_w, fb2)


def _reference(x_nhwc, conv_w, conv_b, fc_w, fc_b):
    y = lax.conv_general_dilated(
        x_nhwc, conv_w, window_strides=(1, 1), padding="SAME",
        dimension_numbers=("NHWC", "HWIO", "NHWC"))
    y = jnp.maximum(y + conv_b[None, None, None, :], 0.0)
    feat = jnp.mean(y, axis=(1, 2))
    return feat @ fc_w + fc_b[None, :]


if __name__ == "__main__":
    key = jax.random.PRNGKey(0)
    k_x, k_cw, k_cb, k_fw, k_fb = jax.random.split(key, 5)

    # Input corresponds to a PyTorch NCHW tensor of shape (2, 4, 16, 16),
    # stored here in NHWC.
    x = jax.random.normal(k_x, (N, H, W, CIN), dtype=jnp.float32)

    # Deterministic synthetic parameters (no checkpoint load).
    conv_w = 0.1 * jax.random.normal(k_cw, (KH, KW, CIN, HID), dtype=jnp.float32)
    conv_b = 0.1 * jax.random.normal(k_cb, (HID,), dtype=jnp.float32)
    fc_w = 0.1 * jax.random.normal(k_fw, (HID, NUM_CLASSES), dtype=jnp.float32)
    fc_b = 0.1 * jax.random.normal(k_fb, (NUM_CLASSES,), dtype=jnp.float32)

    out = nousta_nocsta_forward(x, conv_w, conv_b, fc_w, fc_b)
    out = jax.block_until_ready(out)

    ref = _reference(x, conv_w, conv_b, fc_w, fc_b)
    assert out.shape == (N, NUM_CLASSES)
    assert jnp.allclose(out, ref, rtol=1e-4, atol=1e-4), "mismatch vs reference"

    print("KERNEL_OK")
</pallas_src>

<mosaic_0001>
module attributes {stable_mosaic.version = 11 : i64} {
  func.func @_model_kernel(%arg0: i32, %arg1: memref<512x37xf32, #tpu.memory_space<vmem>>, %arg2: memref<37x32xf32, #tpu.memory_space<vmem>>, %arg3: memref<2x512xf32, #tpu.memory_space<vmem>>, %arg4: memref<32x10xf32, #tpu.memory_space<vmem>>, %arg5: memref<1x10xf32, #tpu.memory_space<vmem>>, %arg6: memref<2x10xf32, #tpu.memory_space<vmem>>) attributes {dimension_semantics = [#tpu.dimension_semantics<arbitrary>], iteration_bounds = array<i64: 1>, scalar_prefetch = 0 : i64, scratch_operands = 0 : i64, tpu.core_type = #tpu.core_type<tc>, window_params = [{pipeline_mode = #tpu.pipeline_mode<synchronous>, transform_indices = @transform_0, window_bounds = array<i64: 512, 37>}, {pipeline_mode = #tpu.pipeline_mode<synchronous>, transform_indices = @transform_1, window_bounds = array<i64: 37, 32>}, {pipeline_mode = #tpu.pipeline_mode<synchronous>, transform_indices = @transform_2, window_bounds = array<i64: 2, 512>}, {pipeline_mode = #tpu.pipeline_mode<synchronous>, transform_indices = @transform_3, window_bounds = array<i64: 32, 10>}, {pipeline_mode = #tpu.pipeline_mode<synchronous>, transform_indices = @transform_4, window_bounds = array<i64: 1, 10>}, {pipeline_mode = #tpu.pipeline_mode<synchronous>, transform_indices = @transform_5, window_bounds = array<i64: 2, 10>}]} {
    %c0 = arith.constant 0 : index
    %c0_0 = arith.constant 0 : index
    %0 = vector.load %arg1[%c0, %c0_0] : memref<512x37xf32, #tpu.memory_space<vmem>>, vector<512x37xf32>
    %c0_1 = arith.constant 0 : index
    %c0_2 = arith.constant 0 : index
    %1 = vector.load %arg2[%c0_1, %c0_2] : memref<37x32xf32, #tpu.memory_space<vmem>>, vector<37x32xf32>
    %cst = arith.constant dense<0.000000e+00> : vector<512x32xf32>
    %2 = tpu.matmul %0, %1, %cst {dimension_numbers = #tpu.dot_dimension_numbers<[1], [0], [0], [1], [0, 0, 1, 1], [], []>} : vector<512x37xf32>, vector<37x32xf32>, vector<512x32xf32> -> vector<512x32xf32>
    %cst_3 = arith.constant 0.000000e+00 : f32
    %3 = vector.broadcast %cst_3 : f32 to vector<512x32xf32>
    %4 = arith.maximumf %2, %3 : vector<512x32xf32>
    %c0_4 = arith.constant 0 : index
    %c0_5 = arith.constant 0 : index
    %5 = vector.load %arg3[%c0_4, %c0_5] : memref<2x512xf32, #tpu.memory_space<vmem>>, vector<2x512xf32>
    %cst_6 = arith.constant dense<0.000000e+00> : vector<2x32xf32>
    %6 = tpu.matmul %5, %4, %cst_6 {dimension_numbers = #tpu.dot_dimension_numbers<[1], [0], [0], [1], [0, 0, 1, 1], [], []>} : vector<2x512xf32>, vector<512x32xf32>, vector<2x32xf32> -> vector<2x32xf32>
    %c0_7 = arith.constant 0 : index
    %c0_8 = arith.constant 0 : index
    %7 = vector.load %arg4[%c0_7, %c0_8] : memref<32x10xf32, #tpu.memory_space<vmem>>, vector<32x10xf32>
    %cst_9 = arith.constant dense<0.000000e+00> : vector<2x10xf32>
    %8 = tpu.matmul %6, %7, %cst_9 {dimension_numbers = #tpu.dot_dimension_numbers<[1], [0], [0], [1], [0, 0, 1, 1], [], []>} : vector<2x32xf32>, vector<32x10xf32>, vector<2x10xf32> -> vector<2x10xf32>
    %c0_10 = arith.constant 0 : index
    %c0_11 = arith.constant 0 : index
    %9 = vector.load %arg5[%c0_10, %c0_11] : memref<1x10xf32, #tpu.memory_space<vmem>>, vector<1x10xf32>
    %10 = vector.broadcast %9 : vector<1x10xf32> to vector<2x10xf32>
    %11 = arith.addf %8, %10 : vector<2x10xf32>
    %c0_12 = arith.constant 0 : index
    %c0_13 = arith.constant 0 : index
    %12 = vector.load %arg6[%c0_12, %c0_13] : memref<2x10xf32, #tpu.memory_space<vmem>>, vector<2x10xf32>
    tpu.vector_store %arg6[%c0_12, %c0_13], %11 {strides = array<i32>} : memref<2x10xf32, #tpu.memory_space<vmem>>, vector<2x10xf32>,
    return
  }
  func.func @transform_0(%arg0: i32) -> (i32, i32) {
    %c0_i32 = arith.constant 0 : i32
    %c0_i32_0 = arith.constant 0 : i32
    %c0_i32_1 = arith.constant 0 : i32
    return %c0_i32, %c0_i32_0 : i32, i32
  }
  func.func @transform_1(%arg0: i32) -> (i32, i32) {
    %c0_i32 = arith.constant 0 : i32
    %c0_i32_0 = arith.constant 0 : i32
    %c0_i32_1 = arith.constant 0 : i32
    return %c0_i32, %c0_i32_0 : i32, i32
  }
  func.func @transform_2(%arg0: i32) -> (i32, i32) {
    %c0_i32 = arith.constant 0 : i32
    %c0_i32_0 = arith.constant 0 : i32
    %c0_i32_1 = arith.constant 0 : i32
    return %c0_i32, %c0_i32_0 : i32, i32
  }
  func.func @transform_3(%arg0: i32) -> (i32, i32) {
    %c0_i32 = arith.constant 0 : i32
    %c0_i32_0 = arith.constant 0 : i32
    %c0_i32_1 = arith.constant 0 : i32
    return %c0_i32, %c0_i32_0 : i32, i32
  }
  func.func @transform_4(%arg0: i32) -> (i32, i32) {
    %c0_i32 = arith.constant 0 : i32
    %c0_i32_0 = arith.constant 0 : i32
    %c0_i32_1 = arith.constant 0 : i32
    return %c0_i32, %c0_i32_0 : i32, i32
  }
  func.func @transform_5(%arg0: i32) -> (i32, i32) {
    %c0_i32 = arith.constant 0 : i32
    %c0_i32_0 = arith.constant 0 : i32
    %c0_i32_1 = arith.constant 0 : i32
    return %c0_i32, %c0_i32_0 : i32, i32
  }
}

</mosaic_0001>

<bundles_post_ra>
// kernel: tpu_custom_call.1
= control target key start
LH: loop header
LB: loop body
LE: loop exit
PB: predicated region body
PF: predicated region fallthrough
CT: control target
= control target key end

     0   :  { %vm90_vm0 = vcmask 302080   ;;  %vm283_vm1 = vcmask 1044480   ;;  %s1842_s0 = inlined_call_operand.vmem [shape: f32[512,37], index: 0, kind: input, shape index: {}]   ;;  %s1843_s1 = inlined_call_operand.vmem [shape: f32[37,32], index: 1, kind: input, shape index: {}]   ;;  %s1844_s2 = inlined_call_operand.vmem [shape: f32[2,512], index: 2, kind: input, shape index: {}]   ;;  %s1845_s3 = inlined_call_operand.vmem [shape: f32[32,10], index: 3, kind: input, shape index: {}]   ;;  %s1846_s4 = inlined_call_operand.vmem [shape: f32[1,10], index: 4, kind: input, shape index: {}]   ;;  %s1847_s5 = inlined_call_operand.hbm [shape: f32[2,10], index: 5, kind: output, shape index: {}]  }
   0x1   :  { %v85_v0 = vld [vmem:[%s1843_s1] sm:$0xff]  ;;  %v86_v1 = vld [vmem:[%s1843_s1 + $0x8] sm:$0xff]  ;;  %v87_v2 = vld [vmem:[%s1843_s1 + $0x10] sm:$0xff] }
   0x2   :  { %v1328_v3 = vpack.c.bf16 %v86_v1, %v85_v0  ;;  %v88_v4 = vld [vmem:[%s1843_s1 + $0x18] sm:$0xff]  ;;  %v21_v5 = vld [vmem:[%s1842_s0] sm:$0xff]  ;;  %v22_v8 = vld [vmem:[%s1842_s0 + $0x8] sm:$0xff] }
   0x3   :  { %v1332_v6 = vpack.c.bf16 %v88_v4, %v87_v2  ;;  %1221 = vmatprep.mubr.msk.f32.mxu0 %vm90_vm0, %v21_v5  ;;  %v89_v7 = vld [vmem:[%s1843_s1 + $0x20] sm:$0x1f]  ;;  %v23_v9 = vld [vmem:[%s1842_s0 + $0x10] sm:$0xff]  ;;  %v66_v11 = vld [vmem:[%s1842_s0 + $0x168] sm:$0xff] }
   0x4   :  { %1329 = vmatprep.subr.bf16.mxu0 %v1328_v3  ;;  %1406 = vmatprep.subr.bf16.mxu1 %v1328_v3  ;;  %v65_v10 = vld [vmem:[%s1842_s0 + $0x160] sm:$0xff]  ;;  %v67_v12 = vld [vmem:[%s1842_s0 + $0x170] sm:$0xff]  ;;  %v24_v13 = vld [vmem:[%s1842_s0 + $0x18] sm:$0xff] }
   0x5   :  { %1331 = vmatpush3.bf16.msra.mxu0 %v1328_v3  ;;  %1409 = vmatpush3.bf16.msra.mxu1 %v1328_v3  ;;  %v25_v14 = vld [vmem:[%s1842_s0 + $0x20] sm:$0xff]  ;;  %v68_v15 = vld [vmem:[%s1842_s0 + $0x178] sm:$0xff]  ;;  %v26_v17 = vld [vmem:[%s1842_s0 + $0x28] sm:$0xff] }
   0x6   :  { %1333 = vmatprep.subr.bf16.mxu0 %v1332_v6  ;;  %1407 = vmatprep.subr.bf16.mxu1 %v1332_v6  ;;  %v69_v16 = vld [vmem:[%s1842_s0 + $0x180] sm:$0xff]  ;;  %v27_v18 = vld [vmem:[%s1842_s0 + $0x30] sm:$0xff]  ;;  %v70_v19 = vld [vmem:[%s1842_s0 + $0x188] sm:$0xff] }
   0x7   :  { %1287 = vmatprep.mubr.msk.f32.mxu1 %vm90_vm0, %v65_v10  ;;  %v71_v20 = vld [vmem:[%s1842_s0 + $0x190] sm:$0xff]  ;;  %v28_v21 = vld [vmem:[%s1842_s0 + $0x38] sm:$0xff]  ;;  %v29_v22 = vld [vmem:[%s1842_s0 + $0x40] sm:$0xff] }
   0x8   :  { %v72_v23 = vld [vmem:[%s1842_s0 + $0x198] sm:$0xff] }
   0x9   :  { %1335 = vmatpush3.bf16.msra.mxu0 %v1332_v6  ;;  %1410 = vmatpush3.bf16.msra.mxu1 %v1332_v6 }
   0xa   :  { %1219 = vmatprep.subr.msk.mxu0 %vm283_vm1, %v89_v7  ;;  %1408 = vmatprep.subr.msk.mxu1 %vm283_vm1, %v89_v7 }
   0xd   :  { %1220 = vmatpush3.msk.msra.mxu0 %vm283_vm1, %v89_v7  ;;  %1411 = vmatpush3.msk.msra.mxu1 %vm283_vm1, %v89_v7 }
   0xe   :  { %1222 = vmatmul.mubr.msk.f32.vlgmr.msra.gmra.mrb[0].mxu0 %vm90_vm0, %v22_v8  ;;  %1288 = vmatmul.mubr.msk.f32.vlgmr.msra.gmra.mrb[0].mxu1 %vm90_vm0, %v66_v11 }
   0xf   :  { %1224 = vmatprep.mubr.msk.f32.mxu0 %vm90_vm0, %v23_v9  ;;  %1290 = vmatprep.mubr.msk.f32.mxu1 %vm90_vm0, %v67_v12 }
  0x12   :  { %1225 = vmatmul.mubr.msk.f32.gmra.mrb[2].mxu0 %vm90_vm0, %v24_v13  ;;  %1291 = vmatmul.mubr.msk.f32.gmra.mrb[2].mxu1 %vm90_vm0, %v68_v15 }
  0x13   :  { %1227 = vmatprep.mubr.msk.f32.mxu0 %vm90_vm0, %v25_v14  ;;  %1293 = vmatprep.mubr.msk.f32.mxu1 %vm90_vm0, %v69_v16 }
  0x16   :  { %1228 = vmatmul.mubr.msk.f32.gmra.mrb[4].mxu0 %vm90_vm0, %v26_v17  ;;  %1294 = vmatmul.mubr.msk.f32.gmra.mrb[4].mxu1 %vm90_vm0, %v70_v19 }
  0x17   :  { %1230 = vmatprep.mubr.msk.f32.mxu0 %vm90_vm0, %v27_v18  ;;  %1296 = vmatprep.mubr.msk.f32.mxu1 %vm90_vm0, %v71_v20 }
  0x18   :  { %10 = vsyncpa [#allocation3], 0  ;;  %v73_v24 = vld [vmem:[%s1842_s0 + $0x1a0] sm:$0xff]  ;;  %v30_v25 = vld [vmem:[%s1842_s0 + $0x48] sm:$0xff]  ;;  %v1442_v7 = vmov 1983009808   ;;  %v742_v9 = vlaneseq }
  0x19   :  { %v31_v26 = vld [vmem:[%s1842_s0 + $0x50] sm:$0xff]  ;;  %v74_v27 = vld [vmem:[%s1842_s0 + $0x1a8] sm:$0xff]  ;;  %v32_v29 = vld [vmem:[%s1842_s0 + $0x58] sm:$0xff]  ;;  %v740_v8 = vunpack.c.l.s4 %v1442_v7  ;;  %vm1444_vm2 = vmmov 0   ;;  %vm910_vm3 = vcmask 261120   ;;  %s1446_s1 = smov [#allocation2]  }
  0x1a   :  { %1231 = vmatmul.mubr.msk.f32.gmra.mrb[6].mxu0 %vm90_vm0, %v28_v21  ;;  %1297 = vmatmul.mubr.msk.f32.gmra.mrb[6].mxu1 %vm90_vm0, %v72_v23  ;;  %v75_v28 = vld [vmem:[%s1842_s0 + $0x1b0] sm:$0xff]  ;;  %v33_v30 = vld [vmem:[%s1842_s0 + $0x60] sm:$0xff]  ;;  %v76_v31 = vld [vmem:[%s1842_s0 + $0x1b8] sm:$0xff]  ;;  %v743_v11 = vshrl.u32 %v742_v9, 7  ;;  %vm984_vm4 = vcmask 74752  }
  0x1b   :  { %1233 = vmatprep.mubr.msk.f32.mxu0 %vm90_vm0, %v29_v22  ;;  %1299 = vmatprep.mubr.msk.f32.mxu1 %vm90_vm0, %v73_v24  ;;  %v77_v32 = vld [vmem:[%s1842_s0 + $0x1c0] sm:$0xff]  ;;  %v34_v33 = vld [vmem:[%s1842_s0 + $0x68] sm:$0xff]  ;;  %v35_v34 = vld [vmem:[%s1842_s0 + $0x70] sm:$0xff]  ;;  %v741_v10 = vunpack.c.0.s8 %v740_v8 }
  0x1c   :  { %v78_v35 = vld [vmem:[%s1842_s0 + $0x1c8] sm:$0xff]  ;;  %v79_v36 = vld [vmem:[%s1842_s0 + $0x1d0] sm:$0xff]  ;;  %v36_v37 = vld [vmem:[%s1842_s0 + $0x78] sm:$0xff] }
  0x1d   :  { %v37_v38 = vld [vmem:[%s1842_s0 + $0x80] sm:$0xff]  ;;  %v80_v39 = vld [vmem:[%s1842_s0 + $0x1d8] sm:$0xff]  ;;  %v38_v41 = vld [vmem:[%s1842_s0 + $0x88] sm:$0xff]  ;;  %v744_v12 = vsub.s32 %v741_v10, %v743_v11 }
  0x1e   :  { %1234 = vmatmul.mubr.msk.f32.gmra.mrb[8].mxu0 %vm90_vm0, %v30_v25  ;;  %1300 = vmatmul.mubr.msk.f32.gmra.mrb[8].mxu1 %vm90_vm0, %v74_v27  ;;  %v81_v40 = vld [vmem:[%s1842_s0 + $0x1e0] sm:$0xff]  ;;  %v39_v42 = vld [vmem:[%s1842_s0 + $0x90] sm:$0xff]  ;;  %v82_v43 = vld [vmem:[%s1842_s0 + $0x1e8] sm:$0xff] }
  0x1f   :  { %1236 = vmatprep.mubr.msk.f32.mxu0 %vm90_vm0, %v31_v26  ;;  %1302 = vmatprep.mubr.msk.f32.mxu1 %vm90_vm0, %v75_v28  ;;  %v83_v44 = vld [vmem:[%s1842_s0 + $0x1f0] sm:$0xff]  ;;  %v40_v45 = vld [vmem:[%s1842_s0 + $0x98] sm:$0xff]  ;;  %v41_v46 = vld [vmem:[%s1842_s0 + $0xa0] sm:$0xff] }
  0x20   :  { %v84_v47 = vld [vmem:[%s1842_s0 + $0x1f8] sm:$0xff]  ;;  %v42_v48 = vld [vmem:[%s1842_s0 + $0xa8] sm:$0xff]  ;;  %v43_v49 = vld [vmem:[%s1842_s0 + $0xb0] sm:$0xff] }
  0x21   :  { %v44_v50 = vld [vmem:[%s1842_s0 + $0xb8] sm:$0xff]  ;;  %v45_v51 = vld [vmem:[%s1842_s0 + $0xc0] sm:$0xff]  ;;  %v46_v52 = vld [vmem:[%s1842_s0 + $0xc8] sm:$0xff] }
  0x22   :  { %1237 = vmatmul.mubr.msk.f32.gmra.mrb[10].mxu0 %vm90_vm0, %v32_v29  ;;  %1303 = vmatmul.mubr.msk.f32.gmra.mrb[10].mxu1 %vm90_vm0, %v76_v31  ;;  %v47_v53 = vld [vmem:[%s1842_s0 + $0xd0] sm:$0xff]  ;;  %v48_v54 = vld [vmem:[%s1842_s0 + $0xd8] sm:$0xff]  ;;  %v49_v55 = vld [vmem:[%s1842_s0 + $0xe0] sm:$0xff] }
  0x23   :  { %1239 = vmatprep.mubr.msk.f32.mxu0 %vm90_vm0, %v33_v30  ;;  %1305 = vmatprep.mubr.msk.f32.mxu1 %vm90_vm0, %v77_v32  ;;  %v50_v56 = vld [vmem:[%s1842_s0 + $0xe8] sm:$0xff]  ;;  %v51_v57 = vld [vmem:[%s1842_s0 + $0xf0] sm:$0xff]  ;;  %v52_v58 = vld [vmem:[%s1842_s0 + $0xf8] sm:$0xff] }
  0x24   :  { %v53_v59 = vld [vmem:[%s1842_s0 + $0x100] sm:$0xff]  ;;  %v54_v60 = vld [vmem:[%s1842_s0 + $0x108] sm:$0xff]  ;;  %v55_v61 = vld [vmem:[%s1842_s0 + $0x110] sm:$0xff] }
  0x25   :  { %v56_v62 = vld [vmem:[%s1842_s0 + $0x118] sm:$0xff]  ;;  %v57_v63 = vld [vmem:[%s1842_s0 + $0x120] sm:$0xff]  ;;  %v58_v0 = vld [vmem:[%s1842_s0 + $0x128] sm:$0xff] }
  0x26   :  { %1240 = vmatmul.mubr.msk.f32.gmra.mrb[12].mxu0 %vm90_vm0, %v34_v33  ;;  %1306 = vmatmul.mubr.msk.f32.gmra.mrb[12].mxu1 %vm90_vm0, %v78_v35  ;;  %v59_v1 = vld [vmem:[%s1842_s0 + $0x130] sm:$0xff]  ;;  %v60_v2 = vld [vmem:[%s1842_s0 + $0x138] sm:$0xff]  ;;  %v61_v3 = vld [vmem:[%s1842_s0 + $0x140] sm:$0xff] }
  0x27   :  { %1242 = vmatprep.mubr.msk.f32.mxu0 %vm90_vm0, %v35_v34  ;;  %1308 = vmatprep.mubr.msk.f32.mxu1 %vm90_vm0, %v79_v36  ;;  %v62_v4 = vld [vmem:[%s1842_s0 + $0x148] sm:$0xff]  ;;  %v63_v5 = vld [vmem:[%s1842_s0 + $0x150] sm:$0xff]  ;;  %v64_v6 = vld [vmem:[%s1842_s0 + $0x158] sm:$0xff] }
  0x28   :  { %v736_v13 = vld [vmem:[%s1844_s2] sm:$0xff] }
  0x29   :  { %v1751_v14 = vrot.slane %v736_v13, %v744_v12  ;;  %v738_v16 = vcombine.high %v736_v13, %v736_v13 }
  0x2a   :  { %1243 = vmatmul.mubr.msk.f32.gmra.mrb[14].mxu0 %vm90_vm0, %v36_v37  ;;  %1309 = vmatmul.mubr.msk.f32.gmra.mrb[14].mxu1 %vm90_vm0, %v80_v39 }
  0x2b   :  { %1245 = vmatprep.mubr.msk.f32.mxu0 %vm90_vm0, %v37_v38  ;;  %1311 = vmatprep.mubr.msk.f32.mxu1 %vm90_vm0, %v81_v40  ;;  %v753_v15 = vcombine.high %v1751_v14, %v1751_v14  ;;  %v1755_v17 = vrot.slane %v738_v16, %v744_v12 }
  0x2e   :  { %1246 = vmatmul.mubr.msk.f32.gmra.mrb[16].mxu0 %vm90_vm0, %v38_v41  ;;  %1312 = vmatmul.mubr.msk.f32.gmra.mrb[16].mxu1 %vm90_vm0, %v82_v43 }
  0x2f   :  { %1248 = vmatprep.mubr.msk.f32.mxu0 %vm90_vm0, %v39_v42  ;;  %1314 = vmatprep.mubr.msk.f32.mxu1 %vm90_vm0, %v83_v44 }
  0x32   :  { %1249 = vmatmul.mubr.msk.f32.gmra.mrb[18].mxu0 %vm90_vm0, %v40_v45  ;;  %1315 = vmatmul.mubr.msk.f32.gmra.mrb[18].mxu1 %vm90_vm0, %v84_v47 }
  0x33   :  { %1251 = vmatprep.mubr.msk.f32.mxu0 %vm90_vm0, %v41_v46  ;;  %823 = vmatprep.mubr.f32.mxu1 %v753_v15 }
  0x36   :  { %1252 = vmatmul.mubr.msk.f32.gmra.mrb[20].mxu0 %vm90_vm0, %v42_v48 }
  0x37   :  { %1254 = vmatprep.mubr.msk.f32.mxu0 %vm90_vm0, %v43_v49 }
  0x3a   :  { %1255 = vmatmul.mubr.msk.f32.gmra.mrb[22].mxu0 %vm90_vm0, %v44_v50 }
  0x3b   :  { %1257 = vmatprep.mubr.msk.f32.mxu0 %vm90_vm0, %v45_v51 }
  0x3e   :  { %1258 = vmatmul.mubr.msk.f32.gmra.mrb[24].mxu0 %vm90_vm0, %v46_v52 }
  0x3f   :  { %1260 = vmatprep.mubr.msk.f32.mxu0 %vm90_vm0, %v47_v53 }
  0x42   :  { %1261 = vmatmul.mubr.msk.f32.gmra.mrb[26].mxu0 %vm90_vm0, %v48_v54 }
  0x43   :  { %1263 = vmatprep.mubr.msk.f32.mxu0 %vm90_vm0, %v49_v55 }
  0x46   :  { %1264 = vmatmul.mubr.msk.f32.gmra.mrb[28].mxu0 %vm90_vm0, %v50_v56 }
  0x47   :  { %1266 = vmatprep.mubr.msk.f32.mxu0 %vm90_vm0, %v51_v57 }
  0x4a   :  { %1267 = vmatmul.mubr.msk.f32.gmra.mrb[30].mxu0 %vm90_vm0, %v52_v58 }
  0x4b   :  { %1269 = vmatprep.mubr.msk.f32.mxu0 %vm90_vm0, %v53_v59 }
  0x4e   :  { %1270 = vmatmul.mubr.msk.f32.gmra.mrb[32].mxu0 %vm90_vm0, %v54_v60 }
  0x4f   :  { %1272 = vmatprep.mubr.msk.f32.mxu0 %vm90_vm0, %v55_v61 }
  0x52   :  { %1273 = vmatmul.mubr.msk.f32.gmra.mrb[34].mxu0 %vm90_vm0, %v56_v62 }
  0x53   :  { %1275 = vmatprep.mubr.msk.f32.mxu0 %vm90_vm0, %v57_v63 }
  0x56   :  { %1276 = vmatmul.mubr.msk.f32.gmra.mrb[36].mxu0 %vm90_vm0, %v58_v0 }
  0x57   :  { %1278 = vmatprep.mubr.msk.f32.mxu0 %vm90_vm0, %v59_v1 }
  0x5a   :  { %1279 = vmatmul.mubr.msk.f32.gmra.mrb[38].mxu0 %vm90_vm0, %v60_v2 }
  0x5b   :  { %1281 = vmatprep.mubr.msk.f32.mxu0 %vm90_vm0, %v61_v3 }
  0x5e   :  { %1282 = vmatmul.mubr.msk.f32.gmra.mrb[40].mxu0 %vm90_vm0, %v62_v4 }
  0x5f   :  { %1284 = vmatprep.mubr.msk.f32.mxu0 %vm90_vm0, %v63_v5 }
  0x62   :  { %1285 = vmatmul.mubr.msk.f32.gmra.mrb[42].mxu0 %vm90_vm0, %v64_v6 }
  0xe1   :  { %v1223_v18 = vpop.f32.mrb[0].mxu0  ;;  %v1289_v21 = vpop.f32.mrb[0].mxu1 }
  0xe2   :  { %v673_v19 = vmax.f32 %v1223_v18, 0.0  ;;  %v353_v20 = vpop.f32.mrb[1].mxu0  ;;  %v717_v23 = vmax.f32 %v1289_v21, 0.0  ;;  %v573_v24 = vpop.f32.mrb[1].mxu1 }
  0xe3   :  { %v672_v22 = vmax.f32 %v353_v20, 0.0  ;;  %v716_v25 = vmax.f32 %v573_v24, 0.0 }
  0xe5   :  { %v1757_v26 = vpack.c.bf16 %v673_v19, %v672_v22  ;;  %v1226_v27 = vpop.f32.mrb[2].mxu0  ;;  %v1759_v30 = vpack.c.bf16 %v717_v23, %v716_v25  ;;  %v1292_v31 = vpop.f32.mrb[2].mxu1 }
  0xe6   :  { %v675_v28 = vmax.f32 %v1226_v27, 0.0  ;;  %v363_v29 = vpop.f32.mrb[3].mxu0  ;;  %v719_v33 = vmax.f32 %v1292_v31, 0.0  ;;  %v583_v34 = vpop.f32.mrb[3].mxu1 }
  0xe7   :  { %v674_v32 = vmax.f32 %v363_v29, 0.0  ;;  %v718_v35 = vmax.f32 %v583_v34, 0.0 }
  0xe9   :  { %v1761_v36 = vpack.c.bf16 %v675_v28, %v674_v32  ;;  %v1229_v37 = vpop.f32.mrb[4].mxu0  ;;  %v1763_v40 = vpack.c.bf16 %v719_v33, %v718_v35  ;;  %v1295_v41 = vpop.f32.mrb[4].mxu1 }
  0xea   :  { %v677_v38 = vmax.f32 %v1229_v37, 0.0  ;;  %v373_v39 = vpop.f32.mrb[5].mxu0  ;;  %v721_v43 = vmax.f32 %v1295_v41, 0.0  ;;  %v593_v44 = vpop.f32.mrb[5].mxu1 }
  0xeb   :  { %v676_v42 = vmax.f32 %v373_v39, 0.0  ;;  %v720_v45 = vmax.f32 %v593_v44, 0.0 }
  0xed   :  { %v1765_v46 = vpack.c.bf16 %v677_v38, %v676_v42  ;;  %v1232_v47 = vpop.f32.mrb[6].mxu0  ;;  %v1767_v50 = vpack.c.bf16 %v721_v43, %v720_v45  ;;  %v1298_v51 = vpop.f32.mrb[6].mxu1 }
  0xee   :  { %v679_v48 = vmax.f32 %v1232_v47, 0.0  ;;  %v383_v49 = vpop.f32.mrb[7].mxu0  ;;  %v723_v53 = vmax.f32 %v1298_v51, 0.0  ;;  %v603_v54 = vpop.f32.mrb[7].mxu1 }
  0xef   :  { %v678_v52 = vmax.f32 %v383_v49, 0.0  ;;  %v722_v55 = vmax.f32 %v603_v54, 0.0 }
  0xf1   :  { %v1769_v56 = vpack.c.bf16 %v679_v48, %v678_v52  ;;  %v1235_v57 = vpop.f32.mrb[8].mxu0  ;;  %v1771_v60 = vpack.c.bf16 %v723_v53, %v722_v55  ;;  %v1301_v61 = vpop.f32.mrb[8].mxu1 }
  0xf2   :  { %v681_v58 = vmax.f32 %v1235_v57, 0.0  ;;  %v393_v59 = vpop.f32.mrb[9].mxu0  ;;  %v725_v63 = vmax.f32 %v1301_v61, 0.0  ;;  %v613_v0 = vpop.f32.mrb[9].mxu1 }
  0xf3   :  { %v680_v62 = vmax.f32 %v393_v59, 0.0  ;;  %v724_v1 = vmax.f32 %v613_v0, 0.0 }
  0xf5   :  { %v1773_v2 = vpack.c.bf16 %v681_v58, %v680_v62  ;;  %v1238_v3 = vpop.f32.mrb[10].mxu0  ;;  %v1775_v6 = vpack.c.bf16 %v725_v63, %v724_v1  ;;  %v1304_v7 = vpop.f32.mrb[10].mxu1 }
  0xf6   :  { %v683_v4 = vmax.f32 %v1238_v3, 0.0  ;;  %v403_v5 = vpop.f32.mrb[11].mxu0  ;;  %v727_v9 = vmax.f32 %v1304_v7, 0.0  ;;  %v623_v10 = vpop.f32.mrb[11].mxu1 }
  0xf7   :  { %v682_v8 = vmax.f32 %v403_v5, 0.0  ;;  %v726_v11 = vmax.f32 %v623_v10, 0.0 }
  0xf9   :  { %v1777_v12 = vpack.c.bf16 %v683_v4, %v682_v8  ;;  %v1241_v13 = vpop.f32.mrb[12].mxu0  ;;  %v1779_v18 = vpack.c.bf16 %v727_v9, %v726_v11  ;;  %v1307_v19 = vpop.f32.mrb[12].mxu1 }
  0xfa   :  { %v685_v15 = vmax.f32 %v1241_v13, 0.0  ;;  %v413_v16 = vpop.f32.mrb[13].mxu0  ;;  %v729_v21 = vmax.f32 %v1307_v19, 0.0  ;;  %v633_v22 = vpop.f32.mrb[13].mxu1 }
  0xfb   :  { %v684_v20 = vmax.f32 %v413_v16, 0.0  ;;  %v728_v23 = vmax.f32 %v633_v22, 0.0 }
  0xfd   :  { %v1781_v24 = vpack.c.bf16 %v685_v15, %v684_v20  ;;  %v1244_v25 = vpop.f32.mrb[14].mxu0  ;;  %v1783_v29 = vpack.c.bf16 %v729_v21, %v728_v23  ;;  %v1310_v31 = vpop.f32.mrb[14].mxu1 }
  0xfe   :  { %v687_v27 = vmax.f32 %v1244_v25, 0.0  ;;  %v423_v28 = vpop.f32.mrb[15].mxu0  ;;  %v731_v33 = vmax.f32 %v1310_v31, 0.0  ;;  %v643_v34 = vpop.f32.mrb[15].mxu1 }
  0xff   :  { %v686_v32 = vmax.f32 %v423_v28, 0.0  ;;  %v730_v35 = vmax.f32 %v643_v34, 0.0 }
 0x101   :  { %v1785_v37 = vpack.c.bf16 %v687_v27, %v686_v32  ;;  %v1247_v38 = vpop.f32.mrb[16].mxu0  ;;  %v1787_v42 = vpack.c.bf16 %v731_v33, %v730_v35  ;;  %v1313_v43 = vpop.f32.mrb[16].mxu1 }
 0x102   :  { %v689_v39 = vmax.f32 %v1247_v38, 0.0  ;;  %v433_v41 = vpop.f32.mrb[17].mxu0  ;;  %v733_v45 = vmax.f32 %v1313_v43, 0.0  ;;  %v653_v47 = vpop.f32.mrb[17].mxu1  ;;  %v754_v43 = vcombine.high %v1755_v17, %v1755_v17 }
 0x103   :  { %v688_v44 = vmax.f32 %v433_v41, 0.0  ;;  %v732_v48 = vmax.f32 %v653_v47, 0.0 }
 0x105   :  { %v1336_v49 = vpack.c.bf16 %v689_v39, %v688_v44  ;;  %v1250_v51 = vpop.f32.mrb[18].mxu0  ;;  %v1789_v54 = vpack.c.bf16 %v733_v45, %v732_v48  ;;  %v1316_v55 = vpop.f32.mrb[18].mxu1 }
 0x106   :  { %v691_v52 = vmax.f32 %v1250_v51, 0.0  ;;  %v443_v53 = vpop.f32.mrb[19].mxu0  ;;  %v735_v58 = vmax.f32 %v1316_v55, 0.0  ;;  %v663_v59 = vpop.f32.mrb[19].mxu1 }
 0x107   :  { %v690_v57 = vmax.f32 %v443_v53, 0.0  ;;  %1337 = vmatprep.subr.bf16.mxu1 %v1336_v49  ;;  %v734_v61 = vmax.f32 %v663_v59, 0.0 }
 0x108   :  { %1339 = vmatpush3.bf16.msra.mxu1 %v1757_v26 }
 0x109   :  { %v1340_v62 = vpack.c.bf16 %v691_v52, %v690_v57  ;;  %v1253_v63 = vpop.f32.mrb[20].mxu0  ;;  %v1792_v3 = vpack.c.bf16 %v735_v58, %v734_v61 }
 0x10a   :  { %v693_v0 = vmax.f32 %v1253_v63, 0.0  ;;  %v453_v1 = vpop.f32.mrb[21].mxu0 }
 0x10b   :  { %v692_v4 = vmax.f32 %v453_v1, 0.0  ;;  %1341 = vmatprep.subr.bf16.mxu1 %v1340_v62 }
 0x10c   :  { %1343 = vmatpush3.bf16.msra.mxu1 %v1761_v36 }
 0x10d   :  { %v1344_v5 = vpack.c.bf16 %v693_v0, %v692_v4  ;;  %v1256_v7 = vpop.f32.mrb[22].mxu0 }
 0x10e   :  { %v695_v8 = vmax.f32 %v1256_v7, 0.0  ;;  %v463_v9 = vpop.f32.mrb[23].mxu0 }
 0x10f   :  { %v694_v10 = vmax.f32 %v463_v9, 0.0  ;;  %1345 = vmatprep.subr.bf16.mxu1 %v1344_v5 }
 0x110   :  { %1347 = vmatpush3.bf16.msra.mxu1 %v1765_v46 }
 0x111   :  { %v1348_v26 = vpack.c.bf16 %v695_v8, %v694_v10  ;;  %v1259_v11 = vpop.f32.mrb[24].mxu0 }
 0x112   :  { %v697_v13 = vmax.f32 %v1259_v11, 0.0  ;;  %v473_v15 = vpop.f32.mrb[25].mxu0 }
 0x113   :  { %v696_v16 = vmax.f32 %v473_v15, 0.0  ;;  %1349 = vmatprep.subr.bf16.mxu1 %v1348_v26  ;;  %v1065_v15 = vld [vmem:[%s1846_s4] ss:$0 sm:$0xff] }
 0x114   :  { %1351 = vmatpush3.bf16.msra.mxu1 %v1769_v56 }
 0x115   :  { %v1352_v19 = vpack.c.bf16 %v697_v13, %v696_v16  ;;  %v1262_v20 = vpop.f32.mrb[26].mxu0 }
 0x116   :  { %v699_v21 = vmax.f32 %v1262_v20, 0.0  ;;  %v483_v36 = vpop.f32.mrb[27].mxu0 }
 0x117   :  { %v698_v22 = vmax.f32 %v483_v36, 0.0  ;;  %1353 = vmatprep.subr.bf16.mxu1 %v1352_v19 }
 0x118   :  { %1355 = vmatpush3.bf16.msra.mxu1 %v1773_v2 }
 0x119   :  { %v1356_v23 = vpack.c.bf16 %v699_v21, %v698_v22  ;;  %v1265_v25 = vpop.f32.mrb[28].mxu0 }
 0x11a   :  { %v701_v27 = vmax.f32 %v1265_v25, 0.0  ;;  %v493_v46 = vpop.f32.mrb[29].mxu0 }
 0x11b   :  { %v700_v28 = vmax.f32 %v493_v46, 0.0  ;;  %1357 = vmatprep.subr.bf16.mxu1 %v1356_v23 }
 0x11c   :  { %1359 = vmatpush3.bf16.msra.mxu1 %v1777_v12 }
 0x11d   :  { %v1360_v31 = vpack.c.bf16 %v701_v27, %v700_v28  ;;  %v1268_v32 = vpop.f32.mrb[30].mxu0 }
 0x11e   :  { %v703_v33 = vmax.f32 %v1268_v32, 0.0  ;;  %v503_v56 = vpop.f32.mrb[31].mxu0 }
 0x11f   :  { %v702_v34 = vmax.f32 %v503_v56, 0.0  ;;  %1361 = vmatprep.subr.bf16.mxu1 %v1360_v31 }
 0x120   :  { %1363 = vmatpush3.bf16.msra.mxu1 %v1781_v24 }
 0x121   :  { %v1364_v35 = vpack.c.bf16 %v703_v33, %v702_v34  ;;  %v1271_v38 = vpop.f32.mrb[32].mxu0 }
 0x122   :  { %v705_v39 = vmax.f32 %v1271_v38, 0.0  ;;  %v513_v2 = vpop.f32.mrb[33].mxu0 }
 0x123   :  { %v704_v41 = vmax.f32 %v513_v2, 0.0  ;;  %1365 = vmatprep.subr.bf16.mxu1 %v1364_v35 }
 0x124   :  { %1367 = vmatpush3.bf16.msra.mxu1 %v1785_v37 }
 0x125   :  { %v1370_v12 = vpack.c.bf16 %v705_v39, %v704_v41  ;;  %v1274_v44 = vpop.f32.mrb[34].mxu0  ;;  %1369 = vmatprep.subr.bf16.mxu1 %v1767_v50 }
 0x126   :  { %v707_v45 = vmax.f32 %v1274_v44, 0.0  ;;  %v523_v47 = vpop.f32.mrb[35].mxu0 }
 0x127   :  { %v706_v48 = vmax.f32 %v523_v47, 0.0  ;;  %824 = vmatmul.mubr.f32.vlgmr.msra.gmra.mrb[20].mxu1 %v1751_v14 }
 0x128   :  { %1371 = vmatpush3.bf16.msra.mxu1 %v1370_v12  ;;  %893 = vmatprep.mubr.f32.mxu1 %v754_v43 }
 0x129   :  { %v1374_v24 = vpack.c.bf16 %v707_v45, %v706_v48  ;;  %v1277_v49 = vpop.f32.mrb[36].mxu0  ;;  %1373 = vmatprep.subr.bf16.mxu1 %v1771_v60 }
 0x12a   :  { %v709_v51 = vmax.f32 %v1277_v49, 0.0  ;;  %v533_v37 = vpop.f32.mrb[37].mxu0 }
 0x12b   :  { %v708_v52 = vmax.f32 %v533_v37, 0.0 }
 0x12c   :  { %1375 = vmatpush3.bf16.msra.mxu1 %v1374_v24 }
 0x12d   :  { %v1378_v53 = vpack.c.bf16 %v709_v51, %v708_v52  ;;  %v1280_v55 = vpop.f32.mrb[38].mxu0  ;;  %1377 = vmatprep.subr.bf16.mxu1 %v1775_v6 }
 0x12e   :  { %v711_v50 = vmax.f32 %v1280_v55, 0.0  ;;  %v543_v57 = vpop.f32.mrb[39].mxu0 }
 0x12f   :  { %v710_v58 = vmax.f32 %v543_v57, 0.0 }
 0x130   :  { %1379 = vmatpush3.bf16.msra.mxu1 %v1378_v53 }
 0x131   :  { %v1382_v59 = vpack.c.bf16 %v711_v50, %v710_v58  ;;  %v1283_v14 = vpop.f32.mrb[40].mxu0  ;;  %1381 = vmatprep.subr.bf16.mxu1 %v1779_v18  ;;  %v899_v18 = vld [vmem:[%s1845_s3] sm:$0xff] }
 0x132   :  { %v713_v61 = vmax.f32 %v1283_v14, 0.0  ;;  %v553_v62 = vpop.f32.mrb[41].mxu0 }
 0x133   :  { %v712_v63 = vmax.f32 %v553_v62, 0.0 }
 0x134   :  { %1383 = vmatpush3.bf16.msra.mxu1 %v1382_v59 }
 0x135   :  { %v1386_v60 = vpack.c.bf16 %v713_v61, %v712_v63  ;;  %v1286_v0 = vpop.f32.mrb[42].mxu0  ;;  %1385 = vmatprep.subr.bf16.mxu1 %v1783_v29  ;;  %v900_v29 = vld [vmem:[%s1845_s3 + $0x8] sm:$0xff] }
 0x136   :  { %v715_v1 = vmax.f32 %v1286_v0, 0.0  ;;  %v563_v4 = vpop.f32.mrb[43].mxu0  ;;  %v1401_v7 = vpack.c.bf16 %v900_v29, %v899_v18 }
 0x137   :  { %v714_v5 = vmax.f32 %v563_v4, 0.0 }
 0x138   :  { %1387 = vmatpush3.bf16.msra.mxu1 %v1386_v60 }
 0x139   :  { %v1390_v6 = vpack.c.bf16 %v715_v1, %v714_v5  ;;  %1389 = vmatprep.subr.bf16.mxu1 %v1787_v42  ;;  %v1443_v42 = vmov 0.0|0.0  }
 0x13c   :  { %1391 = vmatpush3.bf16.msra.mxu1 %v1390_v6 }
 0x13d   :  { %1393 = vmatprep.subr.bf16.mxu1 %v1789_v54  ;;  %v1445_v54 = vmov 0.0  }
 0x140   :  { %1395 = vmatpush3.bf16.msra.mxu1 %v1759_v30  ;;  %v901_v30 = vld [vmem:[%s1845_s3 + $0x10] sm:$0xff] }
 0x141   :  { %1397 = vmatprep.subr.bf16.mxu1 %v1792_v3 }
 0x144   :  { %1399 = vmatpush3.bf16.msra.mxu1 %v1763_v40 }
 0x145   :  { %1400 = vmatprep.subr.bf16.mxu1 %v1443_v42 }
 0x147   :  { %894 = vmatmul.mubr.f32.vlgmr.msra.gmra.mrb[22].mxu1 %v1755_v17  ;;  %v902_v17 = vld [vmem:[%s1845_s3 + $0x18] sm:$0xff]  ;;  %s992_s3 = sshll.u32 %s1446_s1, 4  ;;  %s993_s3 = int_to_ptr.vmem [resolvable:$true] %s992_s3 }
 0x148   :  { %1402 = vmatpush3.bf16.msra.mxu1 %v1401_v7  ;;  %v1404_v40 = vpack.c.bf16 %v902_v17, %v901_v30  ;;  %1325 = vmatprep.mubr.msk.f32.mxu1 %vm1444_vm2, %v1445_v54  ;;  %s1418_s11 = scalar_lea.vmem %s993_s3, 32  ;;  %p1423_p1 = scmp.lt.s32.totalorder %s993_s3, %s993_s3 }
 0x149   :  { %1403 = vmatprep.subr.bf16.mxu1 %v1443_v42  ;;  %p1419_p0 = scmp.ne.s32.totalorder %s993_s3, %s1418_s11  ;;  %p1424_p2 = scmp.lt.s32.totalorder %s1418_s11, %s1418_s11 }
 0x14b   :  { %p1425_p3 = por %p1424_p2, %p1423_p1 }
 0x14c   :  { %1405 = vmatpush3.bf16.msra.mxu1 %v1404_v40 }
 0x14d   :  { %p1426_p4 = pnand %p1425_p3, %p1419_p0 }
 0x1fa   :  { %v1168_v3 = vpop.f32.mrb[20].mxu1 }
 0x1fb   :  { %v1169_v8 = vpop.f32.mrb[21].mxu1 }
 0x1fc   :  { %v1170_v9 = vadd.f32 %v1169_v8, %v1168_v3 }
 0x21a   :  { %v1203_v10 = vpop.f32.mrb[22].mxu1 }
 0x21b   :  { %v1204_v26 = vpop.f32.mrb[23].mxu1 }
 0x21c   :  { %v1205_v11 = vadd.f32 %v1204_v26, %v1203_v10 }
 0x21e   :  { %v896_v13 = vadd.f32 %v1205_v11, %v1170_v9 }
 0x220   :  { %1326 = vmatmul.mubr.msk.f32.vlgmr.msra.gmra.mrb[24].mxu1 %vm910_vm3, %v896_v13 }
 0x2f3   :  { %v980_v16 = vpop.f32.mrb[24].mxu1 }
 0x2f4   :  { %v981_v19 = vadd.f32 %v1065_v15, %v980_v16  ;;  %v1327_v20 = vpop.f32.mrb[25].mxu1 }
 0x2f6   :  { %985 = vst.msk [vmem:[#allocation2] sm:$0x3] %vm984_vm4, %v981_v19 }
 0x2f7   :  { %1429 = shalt.err (!%p1426_p4)
}
 0x2f8   :  { %s1430_s14 = scalar_lea.hbm %s1847_s5, 32 }
 0x2f9   :  { %p1431_p5 = scmp.ne.s32.totalorder %s1847_s5, %s1430_s14  ;;  %p1434_p6 = scmp.lt.u32.totalorder %s1430_s14, %s1847_s5 }
 0x2fb   :  { %p1436_p7 = pnand %p1434_p6, %p1431_p5 }
 0x2fd   :  { %1439 = shalt.err (!%p1436_p7)
}
 0x2fe   :  { %995 = dma.vmem_to_hbm [thread:$0]  %s993_s3, 32, %s1847_s5, [#allocation3]  }
 0x2ff   :  { %1440 = dma.done.wait [#allocation3], 32  }
 0x300   :  { %1441 = vsyncadd [#allocation3], 4294967264 }
 0x301   :  { %999 = vsyncpa [#allocation3], 1 }

</bundles_post_ra>
